<compile_context>
chip_gen: v7x
topology: tpu7x:2x2x1
jax: 0.10.0
libtpu: 0.0.40
codegen_flags: <defaults>
</compile_context>

<pallas_src>
import functools

import jax
import jax.numpy as jnp
from jax import lax
from jax.experimental import pallas as pl
from jax.experimental.pallas import tpu as pltpu


# ----------------------------- Pallas kernel --------------------------------
def _seq2seq_kernel(x_ref, w_ref, b_ref, y_ref, *,
                    t_in, t_out, batch, hidden, feat):
    H = hidden
    B = batch
    F = feat

    # Packed weights (g-gate columns pre-scaled by 2 in the wrapper):
    #   rows [0:F)        -> W_ih1^T  (F, 4H)
    #   rows [F:F+H)      -> W_hh1^T  (H, 4H)
    #   rows [F+H:F+2H)   -> W_hh2^T  (H, 4H)
    wih1 = w_ref[0:F, :]
    whh1 = w_ref[F:F + H, :]
    whh2 = w_ref[F + H:F + 2 * H, :]

    bb = b_ref[...]                                   # (2, 4H)
    b1 = bb[0:1, :]                                   # encoder bias (bih1+bhh1)
    b2 = jnp.broadcast_to(bb[1:2, :], (B, 4 * H))     # decoder bias, hoisted

    def cell(gates, c_prev, first=False):
        # gates: (B, 4H), PyTorch gate order i, f, g, o.
        # Single EUP push: sigmoid over the whole gate vreg; the g-gate
        # pre-activation was doubled in the wrapper so
        #   tanh(g) == 2 * sigmoid(2g) - 1 == 2 * sig[:, 2H:3H] - 1.
        sig = jax.nn.sigmoid(gates)
        i = sig[:, 0 * H:1 * H]
        f = sig[:, 1 * H:2 * H]
        g = 2.0 * sig[:, 2 * H:3 * H] - 1.0
        o = sig[:, 3 * H:4 * H]
        if first:
            c_new = i * g                   # c_prev == 0 (peeled first step)
        else:
            c_new = f * c_prev + i * g
        h_new = o * jnp.tanh(c_new)         # second (unavoidable) EUP push
        return h_new, c_new

    # ---- encoder input projection hoisted out of the recurrence ----
    # x_ref is time-major flattened: (T_in*B, F). One matmul, bias folded in.
    xg = jnp.dot(x_ref[...], wih1,
                 preferred_element_type=jnp.float32) + b1      # (T_in*B, 4H)

    # ---- encoder: lstm1 over x, keep only final (h, c); step 0 peeled ----
    h, c = cell(xg[0:B, :], None, first=True)
    for t in range(1, t_in):
        gates = xg[t * B:(t + 1) * B, :] + jnp.dot(
            h, whh1, preferred_element_type=jnp.float32)
        h, c = cell(gates, c)

    # ---- decoder: lstm2 over zero inputs, initial state = encoder (h, c) ----
    # Per-step lane-slice stores (stream into the output; no epilogue concat).
    for t in range(t_out):
        gates = jnp.dot(h, whh2, preferred_element_type=jnp.float32) + b2
        h, c = cell(gates, c)
        y_ref[:, t * H:(t + 1) * H] = h


# --------------------------------- wrapper -----------------------------------
def seq2seq1_forward(x, params, output_shape):
    """x: (B, T_in, F) float32.  Returns (B, T_out, H) float32."""
    B, T_in, F = x.shape
    T_out, H = output_shape

    wih1, whh1, bih1, bhh1 = params["lstm1"]
    wih2, whh2, bih2, bhh2 = params["lstm2"]
    del wih2  # decoder inputs are zeros; its input-to-hidden contribution is 0

    def prep_w(w):
        # (4H, K) torch layout -> (K, 4H); double the g-gate columns so the
        # kernel can recover tanh(g) from a single sigmoid.
        wt = jnp.transpose(w).astype(jnp.float32)
        return wt.at[:, 2 * H:3 * H].multiply(2.0)

    def prep_b(bi, bh):
        b = (bi + bh).reshape(1, 4 * H).astype(jnp.float32)
        return b.at[:, 2 * H:3 * H].multiply(2.0)

    wih1_t = prep_w(wih1)                                   # (F, 4H)
    whh1_t = prep_w(whh1)                                   # (H, 4H)
    whh2_t = prep_w(whh2)                                   # (H, 4H)
    b1 = prep_b(bih1, bhh1)                                 # (1, 4H)
    b2 = prep_b(bih2, bhh2)                                 # (1, 4H)

    # Pack operands: 3 kernel inputs instead of 6.
    w_pack = jnp.concatenate([wih1_t, whh1_t, whh2_t], axis=0)   # (F+2H, 4H)
    b_pack = jnp.concatenate([b1, b2], axis=0)                   # (2, 4H)

    # time-major flatten of x: row block t holds x[:, t, :]
    x_flat = jnp.transpose(x, (1, 0, 2)).reshape(T_in * B, F).astype(jnp.float32)

    kernel = functools.partial(_seq2seq_kernel, t_in=T_in, t_out=T_out,
                               batch=B, hidden=H, feat=F)

    flops = 2 * (T_in * B * F + (T_in - 1) * B * H + T_out * B * H) * 4 * H
    transcendentals = (T_in + T_out) * B * 5 * H
    bytes_accessed = 4 * (x_flat.size + w_pack.size + b_pack.size
                          + B * T_out * H)

    y_flat = pl.pallas_call(
        kernel,
        out_shape=jax.ShapeDtypeStruct((B, T_out * H), jnp.float32),
        in_specs=[pl.BlockSpec(memory_space=pltpu.MemorySpace.VMEM)] * 3,
        out_specs=pl.BlockSpec(memory_space=pltpu.MemorySpace.VMEM),
        compiler_params=pltpu.CompilerParams(vmem_limit_bytes=2 * 1024 * 1024),
        cost_estimate=pl.CostEstimate(flops=flops,
                                      transcendentals=transcendentals,
                                      bytes_accessed=bytes_accessed),
    )(x_flat, w_pack, b_pack)

    return y_flat.reshape(B, T_out, H)


# ------------------------- pure-JAX reference (check) ------------------------
def _lstm_ref(x, wih, whh, bih, bhh, h0, c0):
    def step(carry, xt):
        h, c = carry
        g = xt @ wih.T + bih + h @ whh.T + bhh
        i, f, gg, o = jnp.split(g, 4, axis=-1)
        c = jax.nn.sigmoid(f) * c + jax.nn.sigmoid(i) * jnp.tanh(gg)
        h = jax.nn.sigmoid(o) * jnp.tanh(c)
        return (h, c), h

    (h, c), ys = lax.scan(step, (h0, c0), jnp.swapaxes(x, 0, 1))
    return jnp.swapaxes(ys, 0, 1), (h, c)


def seq2seq1_reference(x, params, output_shape):
    B = x.shape[0]
    T_out, H = output_shape
    wih1, whh1, bih1, bhh1 = params["lstm1"]
    wih2, whh2, bih2, bhh2 = params["lstm2"]
    h0 = jnp.zeros((B, H), jnp.float32)
    c0 = jnp.zeros((B, H), jnp.float32)
    _, (h1, c1) = _lstm_ref(x, wih1, whh1, bih1, bhh1, h0, c0)
    z = jnp.zeros((B, T_out, H), jnp.float32)
    y, _ = _lstm_ref(z, wih2, whh2, bih2, bhh2, h1, c1)
    return y


# ---------------------------------- main -------------------------------------
if __name__ == "__main__":
    # small shapes consistent with the module:
    #   input_shape  = (T_in, F)  -> lstm1 input_size = F
    #   output_shape = (T_out, H) -> decoder zero input has feature dim = hidden
    B, T_in, F = 2, 8, 16
    H = 32
    T_out = 6
    output_shape = (T_out, H)

    key = jax.random.PRNGKey(0)
    k = 1.0 / jnp.sqrt(jnp.float32(H))

    def uni(key, shape):
        return jax.random.uniform(key, shape, jnp.float32, -k, k)

    keys = jax.random.split(key, 9)
    params = {
        "lstm1": (uni(keys[0], (4 * H, F)),   # W_ih1
                  uni(keys[1], (4 * H, H)),   # W_hh1
                  uni(keys[2], (4 * H,)),     # b_ih1
                  uni(keys[3], (4 * H,))),    # b_hh1
        "lstm2": (uni(keys[4], (4 * H, H)),   # W_ih2 (unused: zero decoder in)
                  uni(keys[5], (4 * H, H)),   # W_hh2
                  uni(keys[6], (4 * H,)),     # b_ih2
                  uni(keys[7], (4 * H,))),    # b_hh2
    }

    x = jax.random.normal(keys[8], (B, T_in, F), jnp.float32)

    y = seq2seq1_forward(x, params, output_shape)
    y = jax.block_until_ready(y)

    y_ref = seq2seq1_reference(x, params, output_shape)
    assert y.shape == (B, T_out, H)
    assert jnp.allclose(y, y_ref, atol=5e-5, rtol=5e-5), (
        float(jnp.max(jnp.abs(y - y_ref))))

    print("KERNEL_OK")
</pallas_src>

<mosaic_0001>
module attributes {stable_mosaic.version = 11 : i64} {
  func.func @_seq2seq_kernel(%arg0: memref<16x16xf32, #tpu.memory_space<vmem>>, %arg1: memref<80x128xf32, #tpu.memory_space<vmem>>, %arg2: memref<2x128xf32, #tpu.memory_space<vmem>>, %arg3: memref<2x192xf32, #tpu.memory_space<vmem>>) attributes {dimension_semantics = [], scalar_prefetch = 0 : i64, scratch_operands = 0 : i64, tpu.core_type = #tpu.core_type<tc>} {
    %c0 = arith.constant 0 : index
    %c0_0 = arith.constant 0 : index
    %0 = vector.load %arg1[%c0, %c0_0] : memref<80x128xf32, #tpu.memory_space<vmem>>, vector<16x128xf32>
    %c16 = arith.constant 16 : index
    %c0_1 = arith.constant 0 : index
    %1 = vector.load %arg1[%c16, %c0_1] : memref<80x128xf32, #tpu.memory_space<vmem>>, vector<32x128xf32>
    %c48 = arith.constant 48 : index
    %c0_2 = arith.constant 0 : index
    %2 = vector.load %arg1[%c48, %c0_2] : memref<80x128xf32, #tpu.memory_space<vmem>>, vector<32x128xf32>
    %c0_3 = arith.constant 0 : index
    %c0_4 = arith.constant 0 : index
    %3 = vector.load %arg2[%c0_3, %c0_4] : memref<2x128xf32, #tpu.memory_space<vmem>>, vector<2x128xf32>
    %4 = vector.extract_strided_slice %3 {offsets = [0, 0], sizes = [1, 128], strides = [1, 1]} : vector<2x128xf32> to vector<1x128xf32>
    %5 = vector.extract_strided_slice %3 {offsets = [1, 0], sizes = [1, 128], strides = [1, 1]} : vector<2x128xf32> to vector<1x128xf32>
    %6 = vector.shape_cast %5 : vector<1x128xf32> to vector<1x128xf32>
    %7 = vector.broadcast %6 : vector<1x128xf32> to vector<2x128xf32>
    %c0_5 = arith.constant 0 : index
    %c0_6 = arith.constant 0 : index
    %8 = vector.load %arg0[%c0_5, %c0_6] : memref<16x16xf32, #tpu.memory_space<vmem>>, vector<16x16xf32>
    %cst = arith.constant dense<0.000000e+00> : vector<16x128xf32>
    %9 = tpu.matmul %8, %0, %cst {dimension_numbers = #tpu.dot_dimension_numbers<[1], [0], [0], [1], [0, 0, 1, 1], [], []>} : vector<16x16xf32>, vector<16x128xf32>, vector<16x128xf32> -> vector<16x128xf32>
    %10 = vector.broadcast %4 : vector<1x128xf32> to vector<16x128xf32>
    %11 = arith.addf %9, %10 : vector<16x128xf32>
    %12 = vector.extract_strided_slice %11 {offsets = [0, 0], sizes = [2, 128], strides = [1, 1]} : vector<16x128xf32> to vector<2x128xf32>
    %13 = arith.negf %12 : vector<2x128xf32>
    %14 = math.exp %13 : vector<2x128xf32>
    %cst_7 = arith.constant 1.000000e+00 : f32
    %15 = vector.broadcast %cst_7 : f32 to vector<2x128xf32>
    %16 = arith.addf %15, %14 : vector<2x128xf32>
    %17 = arith.divf %15, %16 : vector<2x128xf32>
    %18 = vector.extract_strided_slice %17 {offsets = [0, 0], sizes = [2, 32], strides = [1, 1]} : vector<2x128xf32> to vector<2x32xf32>
    %19 = vector.extract_strided_slice %17 {offsets = [0, 64], sizes = [2, 32], strides = [1, 1]} : vector<2x128xf32> to vector<2x32xf32>
    %cst_8 = arith.constant 2.000000e+00 : f32
    %20 = vector.broadcast %cst_8 : f32 to vector<2x32xf32>
    %21 = arith.mulf %20, %19 : vector<2x32xf32>
    %cst_9 = arith.constant 1.000000e+00 : f32
    %22 = vector.broadcast %cst_9 : f32 to vector<2x32xf32>
    %23 = arith.subf %21, %22 : vector<2x32xf32>
    %24 = vector.extract_strided_slice %17 {offsets = [0, 96], sizes = [2, 32], strides = [1, 1]} : vector<2x128xf32> to vector<2x32xf32>
    %25 = arith.mulf %18, %23 : vector<2x32xf32>
    %26 = math.tanh %25 : vector<2x32xf32>
    %27 = arith.mulf %24, %26 : vector<2x32xf32>
    %28 = vector.extract_strided_slice %11 {offsets = [2, 0], sizes = [2, 128], strides = [1, 1]} : vector<16x128xf32> to vector<2x128xf32>
    %cst_10 = arith.constant dense<0.000000e+00> : vector<2x128xf32>
    %29 = tpu.matmul %27, %1, %cst_10 {dimension_numbers = #tpu.dot_dimension_numbers<[1], [0], [0], [1], [0, 0, 1, 1], [], []>} : vector<2x32xf32>, vector<32x128xf32>, vector<2x128xf32> -> vector<2x128xf32>
    %30 = arith.addf %28, %29 : vector<2x128xf32>
    %31 = arith.negf %30 : vector<2x128xf32>
    %32 = math.exp %31 : vector<2x128xf32>
    %cst_11 = arith.constant 1.000000e+00 : f32
    %33 = vector.broadcast %cst_11 : f32 to vector<2x128xf32>
    %34 = arith.addf %33, %32 : vector<2x128xf32>
    %35 = arith.divf %33, %34 : vector<2x128xf32>
    %36 = vector.extract_strided_slice %35 {offsets = [0, 0], sizes = [2, 32], strides = [1, 1]} : vector<2x128xf32> to vector<2x32xf32>
    %37 = vector.extract_strided_slice %35 {offsets = [0, 32], sizes = [2, 32], strides = [1, 1]} : vector<2x128xf32> to vector<2x32xf32>
    %38 = vector.extract_strided_slice %35 {offsets = [0, 64], sizes = [2, 32], strides = [1, 1]} : vector<2x128xf32> to vector<2x32xf32>
    %cst_12 = arith.constant 2.000000e+00 : f32
    %39 = vector.broadcast %cst_12 : f32 to vector<2x32xf32>
    %40 = arith.mulf %39, %38 : vector<2x32xf32>
    %cst_13 = arith.constant 1.000000e+00 : f32
    %41 = vector.broadcast %cst_13 : f32 to vector<2x32xf32>
    %42 = arith.subf %40, %41 : vector<2x32xf32>
    %43 = vector.extract_strided_slice %35 {offsets = [0, 96], sizes = [2, 32], strides = [1, 1]} : vector<2x128xf32> to vector<2x32xf32>
    %44 = arith.mulf %37, %25 : vector<2x32xf32>
    %45 = arith.mulf %36, %42 : vector<2x32xf32>
    %46 = arith.addf %44, %45 : vector<2x32xf32>
    %47 = math.tanh %46 : vector<2x32xf32>
    %48 = arith.mulf %43, %47 : vector<2x32xf32>
    %49 = vector.extract_strided_slice %11 {offsets = [4, 0], sizes = [2, 128], strides = [1, 1]} : vector<16x128xf32> to vector<2x128xf32>
    %cst_14 = arith.constant dense<0.000000e+00> : vector<2x128xf32>
    %50 = tpu.matmul %48, %1, %cst_14 {dimension_numbers = #tpu.dot_dimension_numbers<[1], [0], [0], [1], [0, 0, 1, 1], [], []>} : vector<2x32xf32>, vector<32x128xf32>, vector<2x128xf32> -> vector<2x128xf32>
    %51 = arith.addf %49, %50 : vector<2x128xf32>
    %52 = arith.negf %51 : vector<2x128xf32>
    %53 = math.exp %52 : vector<2x128xf32>
    %cst_15 = arith.constant 1.000000e+00 : f32
    %54 = vector.broadcast %cst_15 : f32 to vector<2x128xf32>
    %55 = arith.addf %54, %53 : vector<2x128xf32>
    %56 = arith.divf %54, %55 : vector<2x128xf32>
    %57 = vector.extract_strided_slice %56 {offsets = [0, 0], sizes = [2, 32], strides = [1, 1]} : vector<2x128xf32> to vector<2x32xf32>
    %58 = vector.extract_strided_slice %56 {offsets = [0, 32], sizes = [2, 32], strides = [1, 1]} : vector<2x128xf32> to vector<2x32xf32>
    %59 = vector.extract_strided_slice %56 {offsets = [0, 64], sizes = [2, 32], strides = [1, 1]} : vector<2x128xf32> to vector<2x32xf32>
    %cst_16 = arith.constant 2.000000e+00 : f32
    %60 = vector.broadcast %cst_16 : f32 to vector<2x32xf32>
    %61 = arith.mulf %60, %59 : vector<2x32xf32>
    %cst_17 = arith.constant 1.000000e+00 : f32
    %62 = vector.broadcast %cst_17 : f32 to vector<2x32xf32>
    %63 = arith.subf %61, %62 : vector<2x32xf32>
    %64 = vector.extract_strided_slice %56 {offsets = [0, 96], sizes = [2, 32], strides = [1, 1]} : vector<2x128xf32> to vector<2x32xf32>
    %65 = arith.mulf %58, %46 : vector<2x32xf32>
    %66 = arith.mulf %57, %63 : vector<2x32xf32>
    %67 = arith.addf %65, %66 : vector<2x32xf32>
    %68 = math.tanh %67 : vector<2x32xf32>
    %69 = arith.mulf %64, %68 : vector<2x32xf32>
    %70 = vector.extract_strided_slice %11 {offsets = [6, 0], sizes = [2, 128], strides = [1, 1]} : vector<16x128xf32> to vector<2x128xf32>
    %cst_18 = arith.constant dense<0.000000e+00> : vector<2x128xf32>
    %71 = tpu.matmul %69, %1, %cst_18 {dimension_numbers = #tpu.dot_dimension_numbers<[1], [0], [0], [1], [0, 0, 1, 1], [], []>} : vector<2x32xf32>, vector<32x128xf32>, vector<2x128xf32> -> vector<2x128xf32>
    %72 = arith.addf %70, %71 : vector<2x128xf32>
    %73 = arith.negf %72 : vector<2x128xf32>
    %74 = math.exp %73 : vector<2x128xf32>
    %cst_19 = arith.constant 1.000000e+00 : f32
    %75 = vector.broadcast %cst_19 : f32 to vector<2x128xf32>
    %76 = arith.addf %75, %74 : vector<2x128xf32>
    %77 = arith.divf %75, %76 : vector<2x128xf32>
    %78 = vector.extract_strided_slice %77 {offsets = [0, 0], sizes = [2, 32], strides = [1, 1]} : vector<2x128xf32> to vector<2x32xf32>
    %79 = vector.extract_strided_slice %77 {offsets = [0, 32], sizes = [2, 32], strides = [1, 1]} : vector<2x128xf32> to vector<2x32xf32>
    %80 = vector.extract_strided_slice %77 {offsets = [0, 64], sizes = [2, 32], strides = [1, 1]} : vector<2x128xf32> to vector<2x32xf32>
    %cst_20 = arith.constant 2.000000e+00 : f32
    %81 = vector.broadcast %cst_20 : f32 to vector<2x32xf32>
    %82 = arith.mulf %81, %80 : vector<2x32xf32>
    %cst_21 = arith.constant 1.000000e+00 : f32
    %83 = vector.broadcast %cst_21 : f32 to vector<2x32xf32>
    %84 = arith.subf %82, %83 : vector<2x32xf32>
    %85 = vector.extract_strided_slice %77 {offsets = [0, 96], sizes = [2, 32], strides = [1, 1]} : vector<2x128xf32> to vector<2x32xf32>
    %86 = arith.mulf %79, %67 : vector<2x32xf32>
    %87 = arith.mulf %78, %84 : vector<2x32xf32>
    %88 = arith.addf %86, %87 : vector<2x32xf32>
    %89 = math.tanh %88 : vector<2x32xf32>
    %90 = arith.mulf %85, %89 : vector<2x32xf32>
    %91 = vector.extract_strided_slice %11 {offsets = [8, 0], sizes = [2, 128], strides = [1, 1]} : vector<16x128xf32> to vector<2x128xf32>
    %cst_22 = arith.constant dense<0.000000e+00> : vector<2x128xf32>
    %92 = tpu.matmul %90, %1, %cst_22 {dimension_numbers = #tpu.dot_dimension_numbers<[1], [0], [0], [1], [0, 0, 1, 1], [], []>} : vector<2x32xf32>, vector<32x128xf32>, vector<2x128xf32> -> vector<2x128xf32>
    %93 = arith.addf %91, %92 : vector<2x128xf32>
    %94 = arith.negf %93 : vector<2x128xf32>
    %95 = math.exp %94 : vector<2x128xf32>
    %cst_23 = arith.constant 1.000000e+00 : f32
    %96 = vector.broadcast %cst_23 : f32 to vector<2x128xf32>
    %97 = arith.addf %96, %95 : vector<2x128xf32>
    %98 = arith.divf %96, %97 : vector<2x128xf32>
    %99 = vector.extract_strided_slice %98 {offsets = [0, 0], sizes = [2, 32], strides = [1, 1]} : vector<2x128xf32> to vector<2x32xf32>
    %100 = vector.extract_strided_slice %98 {offsets = [0, 32], sizes = [2, 32], strides = [1, 1]} : vector<2x128xf32> to vector<2x32xf32>
    %101 = vector.extract_strided_slice %98 {offsets = [0, 64], sizes = [2, 32], strides = [1, 1]} : vector<2x128xf32> to vector<2x32xf32>
    %cst_24 = arith.constant 2.000000e+00 : f32
    %102 = vector.broadcast %cst_24 : f32 to vector<2x32xf32>
    %103 = arith.mulf %102, %101 : vector<2x32xf32>
    %cst_25 = arith.constant 1.000000e+00 : f32
    %104 = vector.broadcast %cst_25 : f32 to vector<2x32xf32>
    %105 = arith.subf %103, %104 : vector<2x32xf32>
    %106 = vector.extract_strided_slice %98 {offsets = [0, 96], sizes = [2, 32], strides = [1, 1]} : vector<2x128xf32> to vector<2x32xf32>
    %107 = arith.mulf %100, %88 : vector<2x32xf32>
    %108 = arith.mulf %99, %105 : vector<2x32xf32>
    %109 = arith.addf %107, %108 : vector<2x32xf32>
    %110 = math.tanh %109 : vector<2x32xf32>
    %111 = arith.mulf %106, %110 : vector<2x32xf32>
    %112 = vector.extract_strided_slice %11 {offsets = [10, 0], sizes = [2, 128], strides = [1, 1]} : vector<16x128xf32> to vector<2x128xf32>
    %cst_26 = arith.constant dense<0.000000e+00> : vector<2x128xf32>
    %113 = tpu.matmul %111, %1, %cst_26 {dimension_numbers = #tpu.dot_dimension_numbers<[1], [0], [0], [1], [0, 0, 1, 1], [], []>} : vector<2x32xf32>, vector<32x128xf32>, vector<2x128xf32> -> vector<2x128xf32>
    %114 = arith.addf %112, %113 : vector<2x128xf32>
    %115 = arith.negf %114 : vector<2x128xf32>
    %116 = math.exp %115 : vector<2x128xf32>
    %cst_27 = arith.constant 1.000000e+00 : f32
    %117 = vector.broadcast %cst_27 : f32 to vector<2x128xf32>
    %118 = arith.addf %117, %116 : vector<2x128xf32>
    %119 = arith.divf %117, %118 : vector<2x128xf32>
    %120 = vector.extract_strided_slice %119 {offsets = [0, 0], sizes = [2, 32], strides = [1, 1]} : vector<2x128xf32> to vector<2x32xf32>
    %121 = vector.extract_strided_slice %119 {offsets = [0, 32], sizes = [2, 32], strides = [1, 1]} : vector<2x128xf32> to vector<2x32xf32>
    %122 = vector.extract_strided_slice %119 {offsets = [0, 64], sizes = [2, 32], strides = [1, 1]} : vector<2x128xf32> to vector<2x32xf32>
    %cst_28 = arith.constant 2.000000e+00 : f32
    %123 = vector.broadcast %cst_28 : f32 to vector<2x32xf32>
    %124 = arith.mulf %123, %122 : vector<2x32xf32>
    %cst_29 = arith.constant 1.000000e+00 : f32
    %125 = vector.broadcast %cst_29 : f32 to vector<2x32xf32>
    %126 = arith.subf %124, %125 : vector<2x32xf32>
    %127 = vector.extract_strided_slice %119 {offsets = [0, 96], sizes = [2, 32], strides = [1, 1]} : vector<2x128xf32> to vector<2x32xf32>
    %128 = arith.mulf %121, %109 : vector<2x32xf32>
    %129 = arith.mulf %120, %126 : vector<2x32xf32>
    %130 = arith.addf %128, %129 : vector<2x32xf32>
    %131 = math.tanh %130 : vector<2x32xf32>
    %132 = arith.mulf %127, %131 : vector<2x32xf32>
    %133 = vector.extract_strided_slice %11 {offsets = [12, 0], sizes = [2, 128], strides = [1, 1]} : vector<16x128xf32> to vector<2x128xf32>
    %cst_30 = arith.constant dense<0.000000e+00> : vector<2x128xf32>
    %134 = tpu.matmul %132, %1, %cst_30 {dimension_numbers = #tpu.dot_dimension_numbers<[1], [0], [0], [1], [0, 0, 1, 1], [], []>} : vector<2x32xf32>, vector<32x128xf32>, vector<2x128xf32> -> vector<2x128xf32>
    %135 = arith.addf %133, %134 : vector<2x128xf32>
    %136 = arith.negf %135 : vector<2x128xf32>
    %137 = math.exp %136 : vector<2x128xf32>
    %cst_31 = arith.constant 1.000000e+00 : f32
    %138 = vector.broadcast %cst_31 : f32 to vector<2x128xf32>
    %139 = arith.addf %138, %137 : vector<2x128xf32>
    %140 = arith.divf %138, %139 : vector<2x128xf32>
    %141 = vector.extract_strided_slice %140 {offsets = [0, 0], sizes = [2, 32], strides = [1, 1]} : vector<2x128xf32> to vector<2x32xf32>
    %142 = vector.extract_strided_slice %140 {offsets = [0, 32], sizes = [2, 32], strides = [1, 1]} : vector<2x128xf32> to vector<2x32xf32>
    %143 = vector.extract_strided_slice %140 {offsets = [0, 64], sizes = [2, 32], strides = [1, 1]} : vector<2x128xf32> to vector<2x32xf32>
    %cst_32 = arith.constant 2.000000e+00 : f32
    %144 = vector.broadcast %cst_32 : f32 to vector<2x32xf32>
    %145 = arith.mulf %144, %143 : vector<2x32xf32>
    %cst_33 = arith.constant 1.000000e+00 : f32
    %146 = vector.broadcast %cst_33 : f32 to vector<2x32xf32>
    %147 = arith.subf %145, %146 : vector<2x32xf32>
    %148 = vector.extract_strided_slice %140 {offsets = [0, 96], sizes = [2, 32], strides = [1, 1]} : vector<2x128xf32> to vector<2x32xf32>
    %149 = arith.mulf %142, %130 : vector<2x32xf32>
    %150 = arith.mulf %141, %147 : vector<2x32xf32>
    %151 = arith.addf %149, %150 : vector<2x32xf32>
    %152 = math.tanh %151 : vector<2x32xf32>
    %153 = arith.mulf %148, %152 : vector<2x32xf32>
    %154 = vector.extract_strided_slice %11 {offsets = [14, 0], sizes = [2, 128], strides = [1, 1]} : vector<16x128xf32> to vector<2x128xf32>
    %cst_34 = arith.constant dense<0.000000e+00> : vector<2x128xf32>
    %155 = tpu.matmul %153, %1, %cst_34 {dimension_numbers = #tpu.dot_dimension_numbers<[1], [0], [0], [1], [0, 0, 1, 1], [], []>} : vector<2x32xf32>, vector<32x128xf32>, vector<2x128xf32> -> vector<2x128xf32>
    %156 = arith.addf %154, %155 : vector<2x128xf32>
    %157 = arith.negf %156 : vector<2x128xf32>
    %158 = math.exp %157 : vector<2x128xf32>
    %cst_35 = arith.constant 1.000000e+00 : f32
    %159 = vector.broadcast %cst_35 : f32 to vector<2x128xf32>
    %160 = arith.addf %159, %158 : vector<2x128xf32>
    %161 = arith.divf %159, %160 : vector<2x128xf32>
    %162 = vector.extract_strided_slice %161 {offsets = [0, 0], sizes = [2, 32], strides = [1, 1]} : vector<2x128xf32> to vector<2x32xf32>
    %163 = vector.extract_strided_slice %161 {offsets = [0, 32], sizes = [2, 32], strides = [1, 1]} : vector<2x128xf32> to vector<2x32xf32>
    %164 = vector.extract_strided_slice %161 {offsets = [0, 64], sizes = [2, 32], strides = [1, 1]} : vector<2x128xf32> to vector<2x32xf32>
    %cst_36 = arith.constant 2.000000e+00 : f32
    %165 = vector.broadcast %cst_36 : f32 to vector<2x32xf32>
    %166 = arith.mulf %165, %164 : vector<2x32xf32>
    %cst_37 = arith.constant 1.000000e+00 : f32
    %167 = vector.broadcast %cst_37 : f32 to vector<2x32xf32>
    %168 = arith.subf %166, %167 : vector<2x32xf32>
    %169 = vector.extract_strided_slice %161 {offsets = [0, 96], sizes = [2, 32], strides = [1, 1]} : vector<2x128xf32> to vector<2x32xf32>
    %170 = arith.mulf %163, %151 : vector<2x32xf32>
    %171 = arith.mulf %162, %168 : vector<2x32xf32>
    %172 = arith.addf %170, %171 : vector<2x32xf32>
    %173 = math.tanh %172 : vector<2x32xf32>
    %174 = arith.mulf %169, %173 : vector<2x32xf32>
    %cst_38 = arith.constant dense<0.000000e+00> : vector<2x128xf32>
    %175 = tpu.matmul %174, %2, %cst_38 {dimension_numbers = #tpu.dot_dimension_numbers<[1], [0], [0], [1], [0, 0, 1, 1], [], []>} : vector<2x32xf32>, vector<32x128xf32>, vector<2x128xf32> -> vector<2x128xf32>
    %176 = arith.addf %175, %7 : vector<2x128xf32>
    %177 = arith.negf %176 : vector<2x128xf32>
    %178 = math.exp %177 : vector<2x128xf32>
    %cst_39 = arith.constant 1.000000e+00 : f32
    %179 = vector.broadcast %cst_39 : f32 to vector<2x128xf32>
    %180 = arith.addf %179, %178 : vector<2x128xf32>
    %181 = arith.divf %179, %180 : vector<2x128xf32>
    %182 = vector.extract_strided_slice %181 {offsets = [0, 0], sizes = [2, 32], strides = [1, 1]} : vector<2x128xf32> to vector<2x32xf32>
    %183 = vector.extract_strided_slice %181 {offsets = [0, 32], sizes = [2, 32], strides = [1, 1]} : vector<2x128xf32> to vector<2x32xf32>
    %184 = vector.extract_strided_slice %181 {offsets = [0, 64], sizes = [2, 32], strides = [1, 1]} : vector<2x128xf32> to vector<2x32xf32>
    %cst_40 = arith.constant 2.000000e+00 : f32
    %185 = vector.broadcast %cst_40 : f32 to vector<2x32xf32>
    %186 = arith.mulf %185, %184 : vector<2x32xf32>
    %cst_41 = arith.constant 1.000000e+00 : f32
    %187 = vector.broadcast %cst_41 : f32 to vector<2x32xf32>
    %188 = arith.subf %186, %187 : vector<2x32xf32>
    %189 = vector.extract_strided_slice %181 {offsets = [0, 96], sizes = [2, 32], strides = [1, 1]} : vector<2x128xf32> to vector<2x32xf32>
    %190 = arith.mulf %183, %172 : vector<2x32xf32>
    %191 = arith.mulf %182, %188 : vector<2x32xf32>
    %192 = arith.addf %190, %191 : vector<2x32xf32>
    %193 = math.tanh %192 : vector<2x32xf32>
    %194 = arith.mulf %189, %193 : vector<2x32xf32>
    %c0_42 = arith.constant 0 : index
    %c0_43 = arith.constant 0 : index
    %195 = vector.load %arg3[%c0_42, %c0_43] : memref<2x192xf32, #tpu.memory_space<vmem>>, vector<2x32xf32>
    tpu.vector_store %arg3[%c0_42, %c0_43], %194 {strides = array<i32>} : memref<2x192xf32, #tpu.memory_space<vmem>>, vector<2x32xf32>,
    %cst_44 = arith.constant dense<0.000000e+00> : vector<2x128xf32>
    %196 = tpu.matmul %194, %2, %cst_44 {dimension_numbers = #tpu.dot_dimension_numbers<[1], [0], [0], [1], [0, 0, 1, 1], [], []>} : vector<2x32xf32>, vector<32x128xf32>, vector<2x128xf32> -> vector<2x128xf32>
    %197 = arith.addf %196, %7 : vector<2x128xf32>
    %198 = arith.negf %197 : vector<2x128xf32>
    %199 = math.exp %198 : vector<2x128xf32>
    %cst_45 = arith.constant 1.000000e+00 : f32
    %200 = vector.broadcast %cst_45 : f32 to vector<2x128xf32>
    %201 = arith.addf %200, %199 : vector<2x128xf32>
    %202 = arith.divf %200, %201 : vector<2x128xf32>
    %203 = vector.extract_strided_slice %202 {offsets = [0, 0], sizes = [2, 32], strides = [1, 1]} : vector<2x128xf32> to vector<2x32xf32>
    %204 = vector.extract_strided_slice %202 {offsets = [0, 32], sizes = [2, 32], strides = [1, 1]} : vector<2x128xf32> to vector<2x32xf32>
    %205 = vector.extract_strided_slice %202 {offsets = [0, 64], sizes = [2, 32], strides = [1, 1]} : vector<2x128xf32> to vector<2x32xf32>
    %cst_46 = arith.constant 2.000000e+00 : f32
    %206 = vector.broadcast %cst_46 : f32 to vector<2x32xf32>
    %207 = arith.mulf %206, %205 : vector<2x32xf32>
    %cst_47 = arith.constant 1.000000e+00 : f32
    %208 = vector.broadcast %cst_47 : f32 to vector<2x32xf32>
    %209 = arith.subf %207, %208 : vector<2x32xf32>
    %210 = vector.extract_strided_slice %202 {offsets = [0, 96], sizes = [2, 32], strides = [1, 1]} : vector<2x128xf32> to vector<2x32xf32>
    %211 = arith.mulf %204, %192 : vector<2x32xf32>
    %212 = arith.mulf %203, %209 : vector<2x32xf32>
    %213 = arith.addf %211, %212 : vector<2x32xf32>
    %214 = math.tanh %213 : vector<2x32xf32>
    %215 = arith.mulf %210, %214 : vector<2x32xf32>
    %c0_48 = arith.constant 0 : index
    %c32 = arith.constant 32 : index
    %216 = vector.load %arg3[%c0_48, %c32] : memref<2x192xf32, #tpu.memory_space<vmem>>, vector<2x32xf32>
    tpu.vector_store %arg3[%c0_48, %c32], %215 {strides = array<i32>} : memref<2x192xf32, #tpu.memory_space<vmem>>, vector<2x32xf32>,
    %cst_49 = arith.constant dense<0.000000e+00> : vector<2x128xf32>
    %217 = tpu.matmul %215, %2, %cst_49 {dimension_numbers = #tpu.dot_dimension_numbers<[1], [0], [0], [1], [0, 0, 1, 1], [], []>} : vector<2x32xf32>, vector<32x128xf32>, vector<2x128xf32> -> vector<2x128xf32>
    %218 = arith.addf %217, %7 : vector<2x128xf32>
    %219 = arith.negf %218 : vector<2x128xf32>
    %220 = math.exp %219 : vector<2x128xf32>
    %cst_50 = arith.constant 1.000000e+00 : f32
    %221 = vector.broadcast %cst_50 : f32 to vector<2x128xf32>
    %222 = arith.addf %221, %220 : vector<2x128xf32>
    %223 = arith.divf %221, %222 : vector<2x128xf32>
    %224 = vector.extract_strided_slice %223 {offsets = [0, 0], sizes = [2, 32], strides = [1, 1]} : vector<2x128xf32> to vector<2x32xf32>
    %225 = vector.extract_strided_slice %223 {offsets = [0, 32], sizes = [2, 32], strides = [1, 1]} : vector<2x128xf32> to vector<2x32xf32>
    %226 = vector.extract_strided_slice %223 {offsets = [0, 64], sizes = [2, 32], strides = [1, 1]} : vector<2x128xf32> to vector<2x32xf32>
    %cst_51 = arith.constant 2.000000e+00 : f32
    %227 = vector.broadcast %cst_51 : f32 to vector<2x32xf32>
    %228 = arith.mulf %227, %226 : vector<2x32xf32>
    %cst_52 = arith.constant 1.000000e+00 : f32
    %229 = vector.broadcast %cst_52 : f32 to vector<2x32xf32>
    %230 = arith.subf %228, %229 : vector<2x32xf32>
    %231 = vector.extract_strided_slice %223 {offsets = [0, 96], sizes = [2, 32], strides = [1, 1]} : vector<2x128xf32> to vector<2x32xf32>
    %232 = arith.mulf %225, %213 : vector<2x32xf32>
    %233 = arith.mulf %224, %230 : vector<2x32xf32>
    %234 = arith.addf %232, %233 : vector<2x32xf32>
    %235 = math.tanh %234 : vector<2x32xf32>
    %236 = arith.mulf %231, %235 : vector<2x32xf32>
    %c0_53 = arith.constant 0 : index
    %c64 = arith.constant 64 : index
    %237 = vector.load %arg3[%c0_53, %c64] : memref<2x192xf32, #tpu.memory_space<vmem>>, vector<2x32xf32>
    tpu.vector_store %arg3[%c0_53, %c64], %236 {strides = array<i32>} : memref<2x192xf32, #tpu.memory_space<vmem>>, vector<2x32xf32>,
    %cst_54 = arith.constant dense<0.000000e+00> : vector<2x128xf32>
    %238 = tpu.matmul %236, %2, %cst_54 {dimension_numbers = #tpu.dot_dimension_numbers<[1], [0], [0], [1], [0, 0, 1, 1], [], []>} : vector<2x32xf32>, vector<32x128xf32>, vector<2x128xf32> -> vector<2x128xf32>
    %239 = arith.addf %238, %7 : vector<2x128xf32>
    %240 = arith.negf %239 : vector<2x128xf32>
    %241 = math.exp %240 : vector<2x128xf32>
    %cst_55 = arith.constant 1.000000e+00 : f32
    %242 = vector.broadcast %cst_55 : f32 to vector<2x128xf32>
    %243 = arith.addf %242, %241 : vector<2x128xf32>
    %244 = arith.divf %242, %243 : vector<2x128xf32>
    %245 = vector.extract_strided_slice %244 {offsets = [0, 0], sizes = [2, 32], strides = [1, 1]} : vector<2x128xf32> to vector<2x32xf32>
    %246 = vector.extract_strided_slice %244 {offsets = [0, 32], sizes = [2, 32], strides = [1, 1]} : vector<2x128xf32> to vector<2x32xf32>
    %247 = vector.extract_strided_slice %244 {offsets = [0, 64], sizes = [2, 32], strides = [1, 1]} : vector<2x128xf32> to vector<2x32xf32>
    %cst_56 = arith.constant 2.000000e+00 : f32
    %248 = vector.broadcast %cst_56 : f32 to vector<2x32xf32>
    %249 = arith.mulf %248, %247 : vector<2x32xf32>
    %cst_57 = arith.constant 1.000000e+00 : f32
    %250 = vector.broadcast %cst_57 : f32 to vector<2x32xf32>
    %251 = arith.subf %249, %250 : vector<2x32xf32>
    %252 = vector.extract_strided_slice %244 {offsets = [0, 96], sizes = [2, 32], strides = [1, 1]} : vector<2x128xf32> to vector<2x32xf32>
    %253 = arith.mulf %246, %234 : vector<2x32xf32>
    %254 = arith.mulf %245, %251 : vector<2x32xf32>
    %255 = arith.addf %253, %254 : vector<2x32xf32>
    %256 = math.tanh %255 : vector<2x32xf32>
    %257 = arith.mulf %252, %256 : vector<2x32xf32>
    %c0_58 = arith.constant 0 : index
    %c96 = arith.constant 96 : index
    %258 = vector.load %arg3[%c0_58, %c96] : memref<2x192xf32, #tpu.memory_space<vmem>>, vector<2x32xf32>
    tpu.vector_store %arg3[%c0_58, %c96], %257 {strides = array<i32>} : memref<2x192xf32, #tpu.memory_space<vmem>>, vector<2x32xf32>,
    %cst_59 = arith.constant dense<0.000000e+00> : vector<2x128xf32>
    %259 = tpu.matmul %257, %2, %cst_59 {dimension_numbers = #tpu.dot_dimension_numbers<[1], [0], [0], [1], [0, 0, 1, 1], [], []>} : vector<2x32xf32>, vector<32x128xf32>, vector<2x128xf32> -> vector<2x128xf32>
    %260 = arith.addf %259, %7 : vector<2x128xf32>
    %261 = arith.negf %260 : vector<2x128xf32>
    %262 = math.exp %261 : vector<2x128xf32>
    %cst_60 = arith.constant 1.000000e+00 : f32
    %263 = vector.broadcast %cst_60 : f32 to vector<2x128xf32>
    %264 = arith.addf %263, %262 : vector<2x128xf32>
    %265 = arith.divf %263, %264 : vector<2x128xf32>
    %266 = vector.extract_strided_slice %265 {offsets = [0, 0], sizes = [2, 32], strides = [1, 1]} : vector<2x128xf32> to vector<2x32xf32>
    %267 = vector.extract_strided_slice %265 {offsets = [0, 32], sizes = [2, 32], strides = [1, 1]} : vector<2x128xf32> to vector<2x32xf32>
    %268 = vector.extract_strided_slice %265 {offsets = [0, 64], sizes = [2, 32], strides = [1, 1]} : vector<2x128xf32> to vector<2x32xf32>
    %cst_61 = arith.constant 2.000000e+00 : f32
    %269 = vector.broadcast %cst_61 : f32 to vector<2x32xf32>
    %270 = arith.mulf %269, %268 : vector<2x32xf32>
    %cst_62 = arith.constant 1.000000e+00 : f32
    %271 = vector.broadcast %cst_62 : f32 to vector<2x32xf32>
    %272 = arith.subf %270, %271 : vector<2x32xf32>
    %273 = vector.extract_strided_slice %265 {offsets = [0, 96], sizes = [2, 32], strides = [1, 1]} : vector<2x128xf32> to vector<2x32xf32>
    %274 = arith.mulf %267, %255 : vector<2x32xf32>
    %275 = arith.mulf %266, %272 : vector<2x32xf32>
    %276 = arith.addf %274, %275 : vector<2x32xf32>
    %277 = math.tanh %276 : vector<2x32xf32>
    %278 = arith.mulf %273, %277 : vector<2x32xf32>
    %c0_63 = arith.constant 0 : index
    %c128 = arith.constant 128 : index
    %279 = vector.load %arg3[%c0_63, %c128] : memref<2x192xf32, #tpu.memory_space<vmem>>, vector<2x32xf32>
    tpu.vector_store %arg3[%c0_63, %c128], %278 {strides = array<i32>} : memref<2x192xf32, #tpu.memory_space<vmem>>, vector<2x32xf32>,
    %cst_64 = arith.constant dense<0.000000e+00> : vector<2x128xf32>
    %280 = tpu.matmul %278, %2, %cst_64 {dimension_numbers = #tpu.dot_dimension_numbers<[1], [0], [0], [1], [0, 0, 1, 1], [], []>} : vector<2x32xf32>, vector<32x128xf32>, vector<2x128xf32> -> vector<2x128xf32>
    %281 = arith.addf %280, %7 : vector<2x128xf32>
    %282 = arith.negf %281 : vector<2x128xf32>
    %283 = math.exp %282 : vector<2x128xf32>
    %cst_65 = arith.constant 1.000000e+00 : f32
    %284 = vector.broadcast %cst_65 : f32 to vector<2x128xf32>
    %285 = arith.addf %284, %283 : vector<2x128xf32>
    %286 = arith.divf %284, %285 : vector<2x128xf32>
    %287 = vector.extract_strided_slice %286 {offsets = [0, 0], sizes = [2, 32], strides = [1, 1]} : vector<2x128xf32> to vector<2x32xf32>
    %288 = vector.extract_strided_slice %286 {offsets = [0, 32], sizes = [2, 32], strides = [1, 1]} : vector<2x128xf32> to vector<2x32xf32>
    %289 = vector.extract_strided_slice %286 {offsets = [0, 64], sizes = [2, 32], strides = [1, 1]} : vector<2x128xf32> to vector<2x32xf32>
    %cst_66 = arith.constant 2.000000e+00 : f32
    %290 = vector.broadcast %cst_66 : f32 to vector<2x32xf32>
    %291 = arith.mulf %290, %289 : vector<2x32xf32>
    %cst_67 = arith.constant 1.000000e+00 : f32
    %292 = vector.broadcast %cst_67 : f32 to vector<2x32xf32>
    %293 = arith.subf %291, %292 : vector<2x32xf32>
    %294 = vector.extract_strided_slice %286 {offsets = [0, 96], sizes = [2, 32], strides = [1, 1]} : vector<2x128xf32> to vector<2x32xf32>
    %295 = arith.mulf %288, %276 : vector<2x32xf32>
    %296 = arith.mulf %287, %293 : vector<2x32xf32>
    %297 = arith.addf %295, %296 : vector<2x32xf32>
    %298 = math.tanh %297 : vector<2x32xf32>
    %299 = arith.mulf %294, %298 : vector<2x32xf32>
    %c0_68 = arith.constant 0 : index
    %c160 = arith.constant 160 : index
    %300 = vector.load %arg3[%c0_68, %c160] : memref<2x192xf32, #tpu.memory_space<vmem>>, vector<2x32xf32>
    tpu.vector_store %arg3[%c0_68, %c160], %299 {strides = array<i32>} : memref<2x192xf32, #tpu.memory_space<vmem>>, vector<2x32xf32>,
    return
  }
}

</mosaic_0001>

<bundles_post_ra>
// kernel: tpu_custom_call.1
= control target key start
LH: loop header
LB: loop body
LE: loop exit
PB: predicated region body
PF: predicated region fallthrough
CT: control target
= control target key end

     0   :  { %8 = vsyncpa [#allocation3], 0  ;;  %s2391_s0 = inlined_call_operand.hbm [shape: f32[16,16], index: 0, kind: input, shape index: {}]   ;;  %s2392_s1 = inlined_call_operand.hbm [shape: f32[80,128], index: 1, kind: input, shape index: {}]   ;;  %s2393_s2 = inlined_call_operand.vmem [shape: f32[2,128], index: 2, kind: input, shape index: {}]   ;;  %s2394_s3 = inlined_call_operand.hbm [shape: f32[2,192], index: 3, kind: output, shape index: {}]  }
   0x1   :  { %9 = vsyncpa [#allocation6], 0 }
   0x2   :  { %10 = vsyncpa [#allocation4], 0  ;;  %s2112_s12 = smov [#allocation2]   ;;  %s2040_s16 = scalar_lea.hbm %s2391_s0, 256 }
   0x3   :  { %s16_s13 = sshll.u32 %s2112_s12, 4  ;;  %p2041_p0 = scmp.ne.s32.totalorder %s2391_s0, %s2040_s16  ;;  %s17_s13 = int_to_ptr.vmem [resolvable:$true] %s16_s13 }
   0x4   :  { %p2044_p1 = scmp.lt.u32.totalorder %s2040_s16, %s2391_s0 }
   0x6   :  { %p2046_p2 = pnand %p2044_p1, %p2041_p0 }
   0x8   :  { %2049 = shalt.err (!%p2046_p2)
}
   0x9   :  { %s2050_s21 = scalar_lea.vmem %s17_s13, 256  ;;  %p2055_p4 = scmp.lt.s32.totalorder %s17_s13, %s17_s13 }
   0xa   :  { %p2051_p3 = scmp.ne.s32.totalorder %s17_s13, %s2050_s21  ;;  %p2056_p5 = scmp.lt.s32.totalorder %s2050_s21, %s2050_s21 }
   0xc   :  { %p2057_p6 = por %p2056_p5, %p2055_p4 }
   0xe   :  { %p2058_p7 = pnand %p2057_p6, %p2051_p3 }
  0x10   :  { %2061 = shalt.err (!%p2058_p7)
}
  0x11   :  { %s2113_s22 = smov 128   ;;  %s2114_s23 = smov 8  }
  0x12   :  { %22 = dma.hbm_to_vmem [thread:$0]  %s2391_s0, 256, %s17_s13, [#allocation3], %s2113_s22, %s2113_s22, %s2114_s23  }
  0x13   :  { %s2115_s26 = smov [#allocation5]   ;;  %s2062_s30 = scalar_lea.hbm %s2392_s1, 1280 }
  0x14   :  { %s28_s27 = sshll.u32 %s2115_s26, 4  ;;  %p2063_p8 = scmp.ne.s32.totalorder %s2392_s1, %s2062_s30  ;;  %s29_s27 = int_to_ptr.vmem [resolvable:$true] %s28_s27 }
  0x15   :  { %p2066_p9 = scmp.lt.u32.totalorder %s2062_s30, %s2392_s1 }
  0x17   :  { %p2068_p10 = pnand %p2066_p9, %p2063_p8 }
  0x19   :  { %2071 = shalt.err (!%p2068_p10)
}
  0x1a   :  { %s2072_s8 = scalar_lea.vmem %s29_s27, 1280  ;;  %p2077_p12 = scmp.lt.s32.totalorder %s29_s27, %s29_s27 }
  0x1b   :  { %p2073_p11 = scmp.ne.s32.totalorder %s29_s27, %s2072_s8  ;;  %p2078_p13 = scmp.lt.s32.totalorder %s2072_s8, %s2072_s8 }
  0x1d   :  { %p2079_p0 = por %p2078_p13, %p2077_p12 }
  0x1f   :  { %p2080_p1 = pnand %p2079_p0, %p2073_p11 }
  0x21   :  { %2083 = shalt.err (!%p2080_p1)
}
  0x22   :  { %34 = dma.hbm_to_vmem [thread:$0]  %s2392_s1, 1280, %s29_s27, [#allocation6], %s2113_s22, %s2113_s22, %s2114_s23  }
  0x23   :  { %2106 = dma.done.wait [#allocation3], 256  }
  0x24   :  { %2107 = vsyncadd [#allocation3], 4294967040 }
  0x25   :  { %2108 = dma.done.wait [#allocation6], 1280  }
  0x26   :  { %2109 = vsyncadd [#allocation6], 4294966016  ;;  %vm64_vm0 = vcmask 130048   ;;  %v43_v0 = vld [vmem:[#allocation5] sm:$0xff]  ;;  %v44_v1 = vld [vmem:[#allocation5 + $0x8] sm:$0xff]  ;;  %v54_v5 = vlaneseq  ;;  %s2116_s11 = smov 64  }
  0x27   :  { %v58_v2 = vld [vmem:[#allocation2] sm:$0xff]  ;;  %v1862_v3 = vpack.c.bf16 %v44_v1, %v43_v0  ;;  %v59_v4 = vld [vmem:[#allocation2 + $0x8] sm:$0xff]  ;;  %v47_v24 = vld [vmem:[#allocation5 + $0x20] sm:$0xff]  ;;  %v2117_v25 = vmov 0.0|0.0   ;;  %vm2118_vm1 = vmmov 0   ;;  %v2119_v28 = vmov 0.0  }
  0x28   :  { %1716 = vmatprep.mubr.msk.f32.mxu0 %vm64_vm0, %v58_v2  ;;  %v2168_v6 = vshrl.u32 %v54_v5, 7  ;;  %v2174_v8 = vld [vmem:[%s2393_s2] sm:$0x3]  ;;  %v46_v23 = vld [vmem:[#allocation5 + $0x18] sm:$0xff]  ;;  %1866 = vmatprep.subr.bf16.mxu1 %v2117_v25  ;;  %v48_v27 = vld [vmem:[#allocation5 + $0x28] sm:$0xff]  ;;  %s2120_s2 = smov 96  }
  0x29   :  { %1863 = vmatprep.subr.bf16.mxu0 %v1862_v3  ;;  %v45_v22 = vld [vmem:[#allocation5 + $0x10] sm:$0xff]  ;;  %1727 = vmatprep.mubr.msk.f32.mxu1 %vm2118_vm1, %v2119_v28  ;;  %v2192_v29 = vpack.c.bf16 %v48_v27, %v47_v24  ;;  %s2121_s12 = smov 32   ;;  %vm168_vm2 = vcmask 261120   ;;  %vm1034_vm3 = vcmask 254976   ;;  %vm1146_vm4 = vcmask 517376   ;;  %s2123_s13 = smov [#allocation7]  }
  0x2a   :  { %1865 = vmatpush3.bf16.msra.mxu0 %v1862_v3  ;;  %v62_v7 = vsub.s32 0, %v2168_v6  ;;  %v2184_v26 = vpack.c.bf16 %v46_v23, %v45_v22  ;;  %vm1258_vm5 = vcmask 779776   ;;  %vm1359_vm6 = vcmask 1042176   ;;  %s1590_s14 = sshll.u32 %s2123_s13, 4  ;;  %s1591_s14 = int_to_ptr.vmem [resolvable:$true] %s1590_s14 }
  0x2b   :  { %1872 = vmatprep.subr.bf16.mxu0 %v2117_v25  ;;  %s2084_s15 = scalar_lea.vmem %s1591_s14, 64  ;;  %p2089_p3 = scmp.lt.s32.totalorder %s1591_s14, %s1591_s14 }
  0x2c   :  { %v63_v9 = vrot.slane %v2174_v8, %v62_v7  ;;  %1868 = vmatpush3.bf16.msra.mxu1 %v2184_v26  ;;  %p2085_p2 = scmp.ne.s32.totalorder %s1591_s14, %s2084_s15  ;;  %p2090_p4 = scmp.lt.s32.totalorder %s2084_s15, %s2084_s15 }
  0x2d   :  { %1717 = vmatmul.mubr.msk.f32.vlgmr.msra.gmra.mrb[0].mxu0 %vm64_vm0, %v59_v4  ;;  %1869 = vmatprep.subr.bf16.mxu1 %v2117_v25 }
  0x2e   :  { %1738 = vmatprep.mubr.msk.f32.mxu0 %vm2118_vm1, %v2119_v28  ;;  %1874 = vmatpush3.bf16.msra.mxu0 %v2184_v26  ;;  %p2091_p5 = por %p2090_p4, %p2089_p3 }
  0x2f   :  { %1875 = vmatprep.subr.bf16.mxu0 %v2117_v25 }
  0x30   :  { %1871 = vmatpush3.bf16.msra.mxu1 %v2192_v29  ;;  %p2092_p6 = pnand %p2091_p5, %p2085_p2 }
  0x31   :  { %1878 = vmatprep.subr.bf16.mxu1 %v2117_v25 }
  0x32   :  { %1877 = vmatpush3.bf16.msra.mxu0 %v2192_v29 }
  0x33   :  { %1884 = vmatprep.subr.bf16.mxu0 %v2117_v25 }
 0x100   :  { %v1718_v10 = vpop.f32.mrb[0].mxu0 }
 0x101   :  { %v2177_v11 = vadd.f32 %v1718_v10, %v63_v9  ;;  %v137_v12 = vpop.f32.mrb[1].mxu0 }
 0x102   :  { %v2179_v13 = vadd.f32 %v137_v12, %v63_v9 }
 0x104   :  { %v1602_v14 = vmul.f32 -1.442695, %v2179_v13 }
 0x106   :  { %1956 = vpow2.f32 %v1602_v14 }
 0x110   :  { %v1957_v15 = vpop.eup %1956 }
 0x111   :  { %v149_v16 = vadd.f32 1.0, %v1957_v15 }
 0x113   :  { %1958 = vrcp.f32 %v149_v16 }
 0x11d   :  { %v1959_v17 = vpop.eup %1958 }
 0x11e   :  { %v152_v18 = vmul.f32 2.0, %v1959_v17 }
 0x120   :  { %v1603_v19 = vadd.f32 -1.0, %v152_v18 }
 0x122   :  { %155 = vrot.lane.b32.xlu0 %v1603_v19, %s2116_s11 }
 0x194   :  { %v156_v20 = vpop.permute.xlu0 %155 }
 0x195   :  { %v158_v21 = vmul.f32 %v1959_v17, %v156_v20 }
 0x197   :  { %1960 = vtanh.f32 %v158_v21  ;;  %v254_v31 = vrot.slane %v158_v21, 6 }
 0x1a1   :  { %v1961_v30 = vpop.eup %1960 }
 0x1a2   :  { %161 = vrot.lane.b32.xlu0 %v1961_v30, %s2120_s2 }
 0x1a6   :  { %255 = vrot.lane.b32.xlu0 %v254_v31, %s2121_s12 }
 0x214   :  { %v162_v32 = vpop.permute.xlu0 %161 }
 0x215   :  { %v164_v33 = vmul.f32 %v1959_v17, %v162_v32 }
 0x217   :  { %166 = vrot.lane.b32.xlu1 %v164_v33, %s2121_s12 }
 0x218   :  { %v256_v47 = vpop.permute.xlu0 %255 }
 0x289   :  { %v167_v34 = vpop.permute.xlu1 %166 }
 0x28a   :  { %1728 = vmatmul.mubr.msk.f32.vlgmr.msra.gmra.mrb[0].mxu1 %vm168_vm2, %v167_v34 }
 0x28b   :  { %1880 = vmatpush3.bf16.msra.mxu1 %v2184_v26  ;;  %1749 = vmatprep.mubr.msk.f32.mxu1 %vm2118_vm1, %v2119_v28 }
 0x28c   :  { %1881 = vmatprep.subr.bf16.mxu1 %v2117_v25 }
 0x28f   :  { %1883 = vmatpush3.bf16.msra.mxu1 %v2192_v29 }
 0x290   :  { %1890 = vmatprep.subr.bf16.mxu1 %v2117_v25 }
 0x35d   :  { %v237_v35 = vpop.f32.mrb[0].mxu1 }
 0x35e   :  { %v242_v36 = vrot.slane %v237_v35, 6  ;;  %v1729_v37 = vpop.f32.mrb[1].mxu1 }
 0x360   :  { %v244_v38 = vadd.f32 %v242_v36, %v2179_v13 }
 0x362   :  { %v1605_v39 = vmul.f32 -1.442695, %v244_v38 }
 0x364   :  { %1962 = vpow2.f32 %v1605_v39 }
 0x36e   :  { %v1963_v40 = vpop.eup %1962 }
 0x36f   :  { %v248_v41 = vadd.f32 1.0, %v1963_v40 }
 0x371   :  { %1964 = vrcp.f32 %v248_v41 }
 0x37b   :  { %v1965_v42 = vpop.eup %1964 }
 0x37c   :  { %v251_v43 = vmul.f32 2.0, %v1965_v42  ;;  %v258_v48 = vmul.f32 %v1965_v42, %v256_v47 }
 0x37e   :  { %v1606_v44 = vadd.f32 -1.0, %v251_v43 }
 0x380   :  { %260 = vrot.lane.b32.xlu1 %v1606_v44, %s2116_s11 }
 0x3f2   :  { %v261_v45 = vpop.permute.xlu1 %260 }
 0x3f3   :  { %v263_v46 = vmul.f32 %v1965_v42, %v261_v45 }
 0x3f5   :  { %265 = vrot.lane.b32.xlu1 %v263_v46, %s2121_s12 }
 0x467   :  { %v266_v49 = vpop.permute.xlu1 %265 }
 0x468   :  { %v268_v50 = vadd.f32 %v266_v49, %v258_v48 }
 0x46a   :  { %1966 = vtanh.f32 %v268_v50  ;;  %v364_v4 = vrot.slane %v268_v50, 6 }
 0x474   :  { %v1967_v51 = vpop.eup %1966 }
 0x475   :  { %271 = vrot.lane.b32.xlu0 %v1967_v51, %s2116_s11 }
 0x4e7   :  { %v272_v52 = vpop.permute.xlu0 %271 }
 0x4e8   :  { %v274_v53 = vmul.f32 %v1965_v42, %v272_v52 }
 0x4ea   :  { %v276_v54 = vrot.slane %v274_v53, 2 }
 0x4ec   :  { %277 = vrot.lane.b32.xlu1 %v276_v54, %s2121_s12 }
 0x55e   :  { %v278_v55 = vpop.permute.xlu1 %277 }
 0x55f   :  { %1739 = vmatmul.mubr.msk.f32.vlgmr.msra.gmra.mrb[2].mxu0 %vm168_vm2, %v278_v55 }
 0x560   :  { %1886 = vmatpush3.bf16.msra.mxu0 %v2184_v26  ;;  %1760 = vmatprep.mubr.msk.f32.mxu0 %vm2118_vm1, %v2119_v28 }
 0x561   :  { %1887 = vmatprep.subr.bf16.mxu0 %v2117_v25 }
 0x564   :  { %1889 = vmatpush3.bf16.msra.mxu0 %v2192_v29 }
 0x565   :  { %1896 = vmatprep.subr.bf16.mxu0 %v2117_v25 }
 0x632   :  { %v347_v56 = vpop.f32.mrb[2].mxu0 }
 0x633   :  { %v352_v57 = vrot.slane %v347_v56, 4  ;;  %v1740_v58 = vpop.f32.mrb[3].mxu0 }
 0x635   :  { %v354_v59 = vadd.f32 %v352_v57, %v2179_v13 }
 0x637   :  { %v1608_v60 = vmul.f32 -1.442695, %v354_v59 }
 0x639   :  { %1968 = vpow2.f32 %v1608_v60 }
 0x643   :  { %v1969_v61 = vpop.eup %1968 }
 0x644   :  { %v358_v62 = vadd.f32 1.0, %v1969_v61 }
 0x646   :  { %1970 = vrcp.f32 %v358_v62 }
 0x650   :  { %v1971_v63 = vpop.eup %1970 }
 0x651   :  { %v361_v0 = vmul.f32 2.0, %v1971_v63  ;;  %v366_v5 = vmul.f32 %v1971_v63, %v364_v4 }
 0x653   :  { %v1609_v1 = vadd.f32 -1.0, %v361_v0 }
 0x655   :  { %368 = vrot.lane.b32.xlu0 %v1609_v1, %s2116_s11 }
 0x6c7   :  { %v369_v2 = vpop.permute.xlu0 %368 }
 0x6c8   :  { %v371_v3 = vmul.f32 %v1971_v63, %v369_v2 }
 0x6ca   :  { %373 = vrot.lane.b32.xlu1 %v371_v3, %s2121_s12 }
 0x73c   :  { %v374_v7 = vpop.permute.xlu1 %373 }
 0x73d   :  { %v376_v9 = vadd.f32 %v374_v7, %v366_v5 }
 0x73f   :  { %1972 = vtanh.f32 %v376_v9  ;;  %v472_v33 = vrot.slane %v376_v9, 6 }
 0x749   :  { %v1973_v10 = vpop.eup %1972 }
 0x74a   :  { %379 = vrot.lane.b32.xlu0 %v1973_v10, %s2116_s11 }
 0x7bc   :  { %v380_v12 = vpop.permute.xlu0 %379 }
 0x7bd   :  { %v382_v14 = vmul.f32 %v1971_v63, %v380_v12 }
 0x7bf   :  { %v384_v15 = vrot.slane %v382_v14, 4 }
 0x7c1   :  { %385 = vrot.lane.b32.xlu1 %v384_v15, %s2121_s12 }
 0x833   :  { %v386_v16 = vpop.permute.xlu1 %385 }
 0x834   :  { %1750 = vmatmul.mubr.msk.f32.vlgmr.msra.gmra.mrb[2].mxu1 %vm168_vm2, %v386_v16 }
 0x835   :  { %1892 = vmatpush3.bf16.msra.mxu1 %v2184_v26  ;;  %1771 = vmatprep.mubr.msk.f32.mxu1 %vm2118_vm1, %v2119_v28 }
 0x836   :  { %1893 = vmatprep.subr.bf16.mxu1 %v2117_v25 }
 0x839   :  { %1895 = vmatpush3.bf16.msra.mxu1 %v2192_v29 }
 0x83a   :  { %1902 = vmatprep.subr.bf16.mxu1 %v2117_v25 }
 0x907   :  { %v455_v17 = vpop.f32.mrb[2].mxu1 }
 0x908   :  { %v460_v18 = vrot.slane %v455_v17, 2  ;;  %v1751_v19 = vpop.f32.mrb[3].mxu1 }
 0x90a   :  { %v462_v20 = vadd.f32 %v460_v18, %v2179_v13 }
 0x90c   :  { %v1611_v21 = vmul.f32 -1.442695, %v462_v20 }
 0x90e   :  { %1974 = vpow2.f32 %v1611_v21 }
 0x918   :  { %v1975_v22 = vpop.eup %1974 }
 0x919   :  { %v466_v23 = vadd.f32 1.0, %v1975_v22 }
 0x91b   :  { %1976 = vrcp.f32 %v466_v23 }
 0x925   :  { %v1977_v24 = vpop.eup %1976 }
 0x926   :  { %v469_v27 = vmul.f32 2.0, %v1977_v24  ;;  %v474_v34 = vmul.f32 %v1977_v24, %v472_v33 }
 0x928   :  { %v1612_v30 = vadd.f32 -1.0, %v469_v27 }
 0x92a   :  { %476 = vrot.lane.b32.xlu0 %v1612_v30, %s2116_s11 }
 0x99c   :  { %v477_v31 = vpop.permute.xlu0 %476 }
 0x99d   :  { %v479_v32 = vmul.f32 %v1977_v24, %v477_v31 }
 0x99f   :  { %481 = vrot.lane.b32.xlu1 %v479_v32, %s2121_s12 }
 0xa11   :  { %v482_v35 = vpop.permute.xlu1 %481 }
 0xa12   :  { %v484_v36 = vadd.f32 %v482_v35, %v474_v34 }
 0xa14   :  { %1978 = vtanh.f32 %v484_v36  ;;  %v577_v52 = vrot.slane %v484_v36, 6 }
 0xa1e   :  { %v1979_v13 = vpop.eup %1978 }
 0xa1f   :  { %487 = vrot.lane.b32.xlu0 %v1979_v13, %s2116_s11 }
 0xa91   :  { %v488_v37 = vpop.permute.xlu0 %487 }
 0xa92   :  { %v490_v38 = vmul.f32 %v1977_v24, %v488_v37 }
 0xa94   :  { %v492_v39 = vrot.slane %v490_v38, 6 }
 0xa96   :  { %493 = vrot.lane.b32.xlu1 %v492_v39, %s2121_s12 }
 0xb08   :  { %v494_v40 = vpop.permute.xlu1 %493 }
 0xb09   :  { %1761 = vmatmul.mubr.msk.f32.vlgmr.msra.gmra.mrb[4].mxu0 %vm168_vm2, %v494_v40 }
 0xb0a   :  { %1898 = vmatpush3.bf16.msra.mxu0 %v2184_v26  ;;  %1782 = vmatprep.mubr.msk.f32.mxu0 %vm2118_vm1, %v2119_v28 }
 0xb0b   :  { %1899 = vmatprep.subr.bf16.mxu0 %v2117_v25 }
 0xb0e   :  { %1901 = vmatpush3.bf16.msra.mxu0 %v2192_v29 }
 0xb0f   :  { %1908 = vmatprep.subr.bf16.mxu0 %v2117_v25 }
 0xbdc   :  { %v563_v41 = vpop.f32.mrb[4].mxu0 }
 0xbdd   :  { %v567_v42 = vadd.f32 %v563_v41, %v2177_v11  ;;  %v1762_v43 = vpop.f32.mrb[5].mxu0 }
 0xbdf   :  { %v1614_v44 = vmul.f32 -1.442695, %v567_v42 }
 0xbe1   :  { %1980 = vpow2.f32 %v1614_v44 }
 0xbeb   :  { %v1981_v45 = vpop.eup %1980 }
 0xbec   :  { %v571_v46 = vadd.f32 1.0, %v1981_v45 }
 0xbee   :  { %1982 = vrcp.f32 %v571_v46 }
 0xbf8   :  { %v1983_v47 = vpop.eup %1982 }
 0xbf9   :  { %v574_v48 = vmul.f32 2.0, %v1983_v47  ;;  %v579_v53 = vmul.f32 %v1983_v47, %v577_v52 }
 0xbfb   :  { %v1615_v49 = vadd.f32 -1.0, %v574_v48 }
 0xbfd   :  { %581 = vrot.lane.b32.xlu0 %v1615_v49, %s2116_s11 }
 0xc6f   :  { %v582_v50 = vpop.permute.xlu0 %581 }
 0xc70   :  { %v584_v51 = vmul.f32 %v1983_v47, %v582_v50 }
 0xc72   :  { %586 = vrot.lane.b32.xlu1 %v584_v51, %s2121_s12 }
 0xce4   :  { %v587_v54 = vpop.permute.xlu1 %586 }
 0xce5   :  { %v589_v55 = vadd.f32 %v587_v54, %v579_v53 }
 0xce7   :  { %1984 = vtanh.f32 %v589_v55 }
 0xcf1   :  { %v1985_v56 = vpop.eup %1984 }
 0xcf2   :  { %592 = vrot.lane.b32.xlu0 %v1985_v56, %s2116_s11 }
 0xd64   :  { %v593_v57 = vpop.permute.xlu0 %592 }
 0xd65   :  { %v595_v58 = vmul.f32 %v1983_v47, %v593_v57 }
 0xd67   :  { %597 = vrot.lane.b32.xlu1 %v595_v58, %s2121_s12 }
 0xdd9   :  { %v598_v59 = vpop.permute.xlu1 %597 }
 0xdda   :  { %1772 = vmatmul.mubr.msk.f32.vlgmr.msra.gmra.mrb[4].mxu1 %vm168_vm2, %v598_v59  ;;  %v50_v59 = vld [vmem:[#allocation5 + $0x38] sm:$0xff] }
 0xddb   :  { %1904 = vmatpush3.bf16.msra.mxu1 %v2184_v26  ;;  %1793 = vmatprep.mubr.msk.f32.mxu1 %vm2118_vm1, %v2119_v28 }
 0xddc   :  { %1905 = vmatprep.subr.bf16.mxu1 %v2117_v25 }
 0xddf   :  { %1907 = vmatpush3.bf16.msra.mxu1 %v2192_v29  ;;  %v684_v29 = vrot.slane %v589_v55, 6 }
 0xde0   :  { %1914 = vmatprep.subr.bf16.mxu1 %v2117_v25 }
 0xead   :  { %v667_v60 = vpop.f32.mrb[4].mxu1 }
 0xeae   :  { %v672_v61 = vrot.slane %v667_v60, 6  ;;  %v1773_v62 = vpop.f32.mrb[5].mxu1  ;;  %v51_v60 = vld [vmem:[#allocation5 + $0x40] sm:$0xff] }
 0xeaf   :  { %v52_v62 = vld [vmem:[#allocation5 + $0x48] sm:$0xff] }
 0xeb0   :  { %v674_v63 = vadd.f32 %v672_v61, %v2177_v11 }
 0xeb2   :  { %v1617_v0 = vmul.f32 -1.442695, %v674_v63  ;;  %v2281_v63 = vpack.c.bf16 %v52_v62, %v51_v60 }
 0xeb4   :  { %1986 = vpow2.f32 %v1617_v0 }
 0xebe   :  { %v1987_v1 = vpop.eup %1986 }
 0xebf   :  { %v678_v2 = vadd.f32 1.0, %v1987_v1 }
 0xec1   :  { %1988 = vrcp.f32 %v678_v2 }
 0xecb   :  { %v1989_v26 = vpop.eup %1988 }
 0xecc   :  { %v681_v3 = vmul.f32 2.0, %v1989_v26  ;;  %v686_v9 = vmul.f32 %v1989_v26, %v684_v29 }
 0xece   :  { %v1618_v4 = vadd.f32 -1.0, %v681_v3 }
 0xed0   :  { %688 = vrot.lane.b32.xlu0 %v1618_v4, %s2116_s11  ;;  %v56_v4 = vsub.s32 1, %v2168_v6 }
 0xf42   :  { %v689_v5 = vpop.permute.xlu0 %688 }
 0xf43   :  { %v691_v7 = vmul.f32 %v1989_v26, %v689_v5  ;;  %v2301_v5 = vrot.slane %v2174_v8, %v56_v4 }
 0xf45   :  { %693 = vrot.lane.b32.xlu1 %v691_v7, %s2121_s12 }
 0xfb7   :  { %v694_v10 = vpop.permute.xlu1 %693 }
 0xfb8   :  { %v696_v12 = vadd.f32 %v694_v10, %v686_v9 }
 0xfba   :  { %1990 = vtanh.f32 %v696_v12  ;;  %v792_v35 = vrot.slane %v696_v12, 6 }
 0xfc4   :  { %v1991_v14 = vpop.eup %1990 }
 0xfc5   :  { %699 = vrot.lane.b32.xlu0 %v1991_v14, %s2116_s11 }
0x1037   :  { %v700_v15 = vpop.permute.xlu0 %699 }
0x1038   :  { %v702_v16 = vmul.f32 %v1989_v26, %v700_v15 }
0x103a   :  { %v704_v17 = vrot.slane %v702_v16, 2 }
0x103c   :  { %705 = vrot.lane.b32.xlu1 %v704_v17, %s2121_s12 }
0x10ae   :  { %v706_v18 = vpop.permute.xlu1 %705 }
0x10af   :  { %1783 = vmatmul.mubr.msk.f32.vlgmr.msra.gmra.mrb[6].mxu0 %vm168_vm2, %v706_v18 }
0x10b0   :  { %1804 = vmatprep.mubr.msk.f32.mxu0 %vm2118_vm1, %v2119_v28 }
0x1182   :  { %v775_v19 = vpop.f32.mrb[6].mxu0 }
0x1183   :  { %v780_v20 = vrot.slane %v775_v19, 4  ;;  %v1784_v21 = vpop.f32.mrb[7].mxu0 }
0x1185   :  { %v782_v22 = vadd.f32 %v780_v20, %v2177_v11 }
0x1187   :  { %v1620_v23 = vmul.f32 -1.442695, %v782_v22 }
0x1189   :  { %1992 = vpow2.f32 %v1620_v23 }
0x1193   :  { %v1993_v24 = vpop.eup %1992 }
0x1194   :  { %v786_v27 = vadd.f32 1.0, %v1993_v24 }
0x1196   :  { %1994 = vrcp.f32 %v786_v27 }
0x11a0   :  { %v1995_v30 = vpop.eup %1994 }
0x11a1   :  { %v789_v31 = vmul.f32 2.0, %v1995_v30  ;;  %v794_v36 = vmul.f32 %v1995_v30, %v792_v35 }
0x11a3   :  { %v1621_v32 = vadd.f32 -1.0, %v789_v31 }
0x11a5   :  { %796 = vrot.lane.b32.xlu0 %v1621_v32, %s2116_s11 }
0x1217   :  { %v797_v33 = vpop.permute.xlu0 %796 }
0x1218   :  { %v799_v34 = vmul.f32 %v1995_v30, %v797_v33 }
0x121a   :  { %801 = vrot.lane.b32.xlu1 %v799_v34, %s2121_s12 }
0x128c   :  { %v802_v13 = vpop.permute.xlu1 %801 }
0x128d   :  { %v804_v37 = vadd.f32 %v802_v13, %v794_v36 }
0x128f   :  { %1996 = vtanh.f32 %v804_v37  ;;  %v900_v55 = vrot.slane %v804_v37, 6 }
0x1299   :  { %v1997_v38 = vpop.eup %1996 }
0x129a   :  { %807 = vrot.lane.b32.xlu0 %v1997_v38, %s2116_s11 }
0x130c   :  { %v808_v39 = vpop.permute.xlu0 %807 }
0x130d   :  { %v810_v40 = vmul.f32 %v1995_v30, %v808_v39 }
0x130f   :  { %v812_v41 = vrot.slane %v810_v40, 4 }
0x1311   :  { %813 = vrot.lane.b32.xlu1 %v812_v41, %s2121_s12 }
0x1383   :  { %v814_v42 = vpop.permute.xlu1 %813 }
0x1384   :  { %1794 = vmatmul.mubr.msk.f32.vlgmr.msra.gmra.mrb[6].mxu1 %vm168_vm2, %v814_v42 }
0x1385   :  { %1815 = vmatprep.mubr.msk.f32.mxu1 %vm2118_vm1, %v2119_v28 }
0x1457   :  { %v883_v43 = vpop.f32.mrb[6].mxu1 }
0x1458   :  { %v888_v44 = vrot.slane %v883_v43, 2  ;;  %v1795_v45 = vpop.f32.mrb[7].mxu1 }
0x145a   :  { %v890_v46 = vadd.f32 %v888_v44, %v2177_v11  ;;  %v49_v11 = vld [vmem:[#allocation5 + $0x30] sm:$0xff] }
0x145b   :  { %v2278_v61 = vpack.c.bf16 %v50_v59, %v49_v11 }
0x145c   :  { %v1623_v47 = vmul.f32 -1.442695, %v890_v46 }
0x145d   :  { %1910 = vmatpush3.bf16.msra.mxu0 %v2278_v61  ;;  %1916 = vmatpush3.bf16.msra.mxu1 %v2278_v61 }
0x145e   :  { %1998 = vpow2.f32 %v1623_v47  ;;  %1911 = vmatprep.subr.bf16.mxu0 %v2117_v25  ;;  %1917 = vmatprep.subr.bf16.mxu1 %v2117_v25 }
0x1461   :  { %1913 = vmatpush3.bf16.msra.mxu0 %v2281_v63  ;;  %1919 = vmatpush3.bf16.msra.mxu1 %v2281_v63 }
0x1462   :  { %1920 = vmatprep.subr.bf16.mxu0 %v2117_v25  ;;  %1926 = vmatprep.subr.bf16.mxu1 %v2117_v25 }
0x1468   :  { %v1999_v48 = vpop.eup %1998 }
0x1469   :  { %v894_v49 = vadd.f32 1.0, %v1999_v48 }
0x146b   :  { %2000 = vrcp.f32 %v894_v49 }
0x1475   :  { %v2001_v50 = vpop.eup %2000 }
0x1476   :  { %v897_v51 = vmul.f32 2.0, %v2001_v50  ;;  %v902_v56 = vmul.f32 %v2001_v50, %v900_v55 }
0x1478   :  { %v1624_v52 = vadd.f32 -1.0, %v897_v51 }
0x147a   :  { %904 = vrot.lane.b32.xlu0 %v1624_v52, %s2116_s11 }
0x14ec   :  { %v905_v53 = vpop.permute.xlu0 %904 }
0x14ed   :  { %v907_v54 = vmul.f32 %v2001_v50, %v905_v53 }
0x14ef   :  { %909 = vrot.lane.b32.xlu1 %v907_v54, %s2121_s12 }
0x1561   :  { %v910_v57 = vpop.permute.xlu1 %909 }
0x1562   :  { %v912_v58 = vadd.f32 %v910_v57, %v902_v56 }
0x1564   :  { %2002 = vtanh.f32 %v912_v58  ;;  %v1004_v8 = vrot.slane %v912_v58, 6 }
0x156e   :  { %v2003_v0 = vpop.eup %2002 }
0x156f   :  { %915 = vrot.lane.b32.xlu0 %v2003_v0, %s2116_s11 }
0x15e1   :  { %v916_v1 = vpop.permute.xlu0 %915 }
0x15e2   :  { %v918_v2 = vmul.f32 %v2001_v50, %v916_v1 }
0x15e4   :  { %v920_v26 = vrot.slane %v918_v2, 6 }
0x15e6   :  { %921 = vrot.lane.b32.xlu1 %v920_v26, %s2121_s12 }
0x1658   :  { %v922_v3 = vpop.permute.xlu1 %921 }
0x1659   :  { %1805 = vmatmul.mubr.msk.f32.vlgmr.msra.gmra.mrb[8].mxu0 %vm168_vm2, %v922_v3 }
0x165a   :  { %1922 = vmatpush3.bf16.msra.mxu0 %v2278_v61  ;;  %1826 = vmatprep.mubr.msk.f32.mxu0 %vm2118_vm1, %v2119_v28 }
0x165b   :  { %1923 = vmatprep.subr.bf16.mxu0 %v2117_v25 }
0x165e   :  { %1925 = vmatpush3.bf16.msra.mxu0 %v2281_v63 }
0x165f   :  { %1932 = vmatprep.subr.bf16.mxu0 %v2117_v25 }
0x172c   :  { %v991_v7 = vpop.f32.mrb[8].mxu0 }
0x172d   :  { %v992_v29 = vadd.f32 %v991_v7, %v2301_v5  ;;  %v1806_v9 = vpop.f32.mrb[9].mxu0 }
0x172f   :  { %v1626_v10 = vmul.f32 -1.442695, %v992_v29 }
0x1731   :  { %2004 = vpow2.f32 %v1626_v10 }
0x173b   :  { %v2005_v12 = vpop.eup %2004 }
0x173c   :  { %v998_v14 = vadd.f32 1.0, %v2005_v12 }
0x173e   :  { %2006 = vrcp.f32 %v998_v14 }
0x1748   :  { %v2007_v15 = vpop.eup %2006 }
0x1749   :  { %v1001_v16 = vmul.f32 2.0, %v2007_v15  ;;  %v1006_v20 = vmul.f32 %v2007_v15, %v1004_v8 }
0x174b   :  { %v1627_v17 = vadd.f32 -1.0, %v1001_v16 }
0x174d   :  { %1008 = vrot.lane.b32.xlu0 %v1627_v17, %s2116_s11 }
0x17bf   :  { %v1009_v18 = vpop.permute.xlu0 %1008 }
0x17c0   :  { %v1011_v19 = vmul.f32 %v2007_v15, %v1009_v18 }
0x17c2   :  { %1013 = vrot.lane.b32.xlu1 %v1011_v19, %s2121_s12 }
0x1834   :  { %v1014_v21 = vpop.permute.xlu1 %1013 }
0x1835   :  { %v1016_v22 = vadd.f32 %v1014_v21, %v1006_v20 }
0x1837   :  { %2008 = vtanh.f32 %v1016_v22 }
0x1841   :  { %v2009_v23 = vpop.eup %2008 }
0x1842   :  { %1019 = vrot.lane.b32.xlu0 %v2009_v23, %s2116_s11 }
0x18b4   :  { %v1020_v24 = vpop.permute.xlu0 %1019 }
0x18b5   :  { %v2307_v27 = vmul.f32 %v2007_v15, %v1020_v24 }
0x18b7   :  { %1036 = vrot.lane.b32.xlu1 %v2307_v27, %s2121_s12 }
0x1929   :  { %v1037_v30 = vpop.permute.xlu1 %1036 }
0x192a   :  { %1816 = vmatmul.mubr.msk.f32.vlgmr.msra.gmra.mrb[8].mxu1 %vm168_vm2, %v1037_v30 }
0x192b   :  { %1928 = vmatpush3.bf16.msra.mxu1 %v2278_v61  ;;  %1837 = vmatprep.mubr.msk.f32.mxu1 %vm2118_vm1, %v2119_v28 }
0x192c   :  { %1929 = vmatprep.subr.bf16.mxu1 %v2117_v25 }
0x192f   :  { %1931 = vmatpush3.bf16.msra.mxu1 %v2281_v63 }
0x1930   :  { %1938 = vmatprep.subr.bf16.mxu1 %v2117_v25 }
0x19fd   :  { %v1106_v31 = vpop.f32.mrb[8].mxu1 }
0x19fe   :  { %v1107_v32 = vadd.f32 %v1106_v31, %v2301_v5  ;;  %v1817_v33 = vpop.f32.mrb[9].mxu1 }
0x1a00   :  { %v1629_v34 = vmul.f32 -1.442695, %v1107_v32 }
0x1a02   :  { %2010 = vpow2.f32 %v1629_v34 }
0x1a0c   :  { %v2011_v35 = vpop.eup %2010 }
0x1a0d   :  { %v1113_v36 = vadd.f32 1.0, %v2011_v35 }
0x1a0f   :  { %2012 = vrcp.f32 %v1113_v36 }
0x1a19   :  { %v2013_v13 = vpop.eup %2012 }
0x1a1a   :  { %v1116_v37 = vmul.f32 2.0, %v2013_v13  ;;  %v1118_v41 = vmul.f32 %v2013_v13, %v1016_v22 }
0x1a1c   :  { %v1630_v38 = vadd.f32 -1.0, %v1116_v37 }
0x1a1e   :  { %1120 = vrot.lane.b32.xlu0 %v1630_v38, %s2116_s11 }
0x1a90   :  { %v1121_v39 = vpop.permute.xlu0 %1120 }
0x1a91   :  { %v1123_v40 = vmul.f32 %v2013_v13, %v1121_v39 }
0x1a93   :  { %1125 = vrot.lane.b32.xlu1 %v1123_v40, %s2121_s12 }
0x1b05   :  { %v1126_v42 = vpop.permute.xlu1 %1125 }
0x1b06   :  { %v1128_v43 = vadd.f32 %v1126_v42, %v1118_v41 }
0x1b08   :  { %2014 = vtanh.f32 %v1128_v43 }
0x1b12   :  { %v2015_v44 = vpop.eup %2014 }
0x1b13   :  { %1131 = vrot.lane.b32.xlu0 %v2015_v44, %s2116_s11 }
0x1b85   :  { %v1132_v45 = vpop.permute.xlu0 %1131 }
0x1b86   :  { %v2322_v46 = vmul.f32 %v2013_v13, %v1132_v45 }
0x1b88   :  { %1148 = vrot.lane.b32.xlu1 %v2322_v46, %s2121_s12 }
0x1bfa   :  { %v1149_v47 = vpop.permute.xlu1 %1148 }
0x1bfb   :  { %1827 = vmatmul.mubr.msk.f32.vlgmr.msra.gmra.mrb[10].mxu0 %vm168_vm2, %v1149_v47 }
0x1bfc   :  { %1934 = vmatpush3.bf16.msra.mxu0 %v2278_v61  ;;  %1848 = vmatprep.mubr.msk.f32.mxu0 %vm2118_vm1, %v2119_v28 }
0x1bfd   :  { %1935 = vmatprep.subr.bf16.mxu0 %v2117_v25 }
0x1c00   :  { %1937 = vmatpush3.bf16.msra.mxu0 %v2281_v63 }
0x1cce   :  { %v1218_v48 = vpop.f32.mrb[10].mxu0 }
0x1ccf   :  { %v1219_v49 = vadd.f32 %v1218_v48, %v2301_v5  ;;  %v1828_v50 = vpop.f32.mrb[11].mxu0 }
0x1cd1   :  { %v1632_v51 = vmul.f32 -1.442695, %v1219_v49 }
0x1cd3   :  { %2016 = vpow2.f32 %v1632_v51  ;;  %v2122_v51 = vmov 1983009808  }
0x1cdd   :  { %v2017_v52 = vpop.eup %2016 }
0x1cde   :  { %v1225_v53 = vadd.f32 1.0, %v2017_v52  ;;  %v1025_v52 = vunpack.c.l.s4 %v2122_v51 }
0x1ce0   :  { %2018 = vrcp.f32 %v1225_v53  ;;  %v1026_v53 = vunpack.c.0.s8 %v1025_v52 }
0x1cea   :  { %v2019_v54 = vpop.eup %2018 }
0x1ceb   :  { %v1228_v55 = vmul.f32 2.0, %v2019_v54  ;;  %v1230_v11 = vmul.f32 %v2019_v54, %v1128_v43 }
0x1ced   :  { %v1633_v56 = vadd.f32 -1.0, %v1228_v55  ;;  %v1029_v55 = vsub.s32 %v1026_v53, %v2168_v6 }
0x1cef   :  { %1232 = vrot.lane.b32.xlu0 %v1633_v56, %s2116_s11 }
0x1d61   :  { %v1233_v57 = vpop.permute.xlu0 %1232 }
0x1d62   :  { %v1235_v58 = vmul.f32 %v2019_v54, %v1233_v57 }
0x1d64   :  { %1237 = vrot.lane.b32.xlu1 %v1235_v58, %s2121_s12 }
0x1dd6   :  { %v1238_v59 = vpop.permute.xlu1 %1237 }
0x1dd7   :  { %v1240_v60 = vadd.f32 %v1238_v59, %v1230_v11 }
0x1dd9   :  { %2020 = vtanh.f32 %v1240_v60 }
0x1de3   :  { %v2021_v62 = vpop.eup %2020 }
0x1de4   :  { %1243 = vrot.lane.b32.xlu0 %v2021_v62, %s2116_s11  ;;  %v1142_v62 = vrot.slane %v2322_v46, %v1029_v55 }
0x1e56   :  { %v1244_v0 = vpop.permute.xlu0 %1243 }
0x1e57   :  { %v2336_v1 = vmul.f32 %v2019_v54, %v1244_v0 }
0x1e59   :  { %1260 = vrot.lane.b32.xlu1 %v2336_v1, %s2121_s12  ;;  %v1254_v57 = vrot.slane %v2336_v1, %v1029_v55 }
0x1ecb   :  { %v1261_v2 = vpop.permute.xlu1 %1260 }
0x1ecc   :  { %1838 = vmatmul.mubr.msk.f32.vlgmr.msra.gmra.mrb[10].mxu1 %vm168_vm2, %v1261_v2 }
0x1ecd   :  { %1940 = vmatpush3.bf16.msra.mxu1 %v2278_v61  ;;  %1859 = vmatprep.mubr.msk.f32.mxu1 %vm2118_vm1, %v2119_v28 }
0x1ece   :  { %1941 = vmatprep.subr.bf16.mxu1 %v2117_v25 }
0x1ed1   :  { %1943 = vmatpush3.bf16.msra.mxu1 %v2281_v63 }
0x1f9f   :  { %v1330_v26 = vpop.f32.mrb[10].mxu1 }
0x1fa0   :  { %v1331_v3 = vadd.f32 %v1330_v26, %v2301_v5  ;;  %v1839_v4 = vpop.f32.mrb[11].mxu1 }
0x1fa2   :  { %v1635_v7 = vmul.f32 -1.442695, %v1331_v3 }
0x1fa4   :  { %2022 = vpow2.f32 %v1635_v7 }
0x1fae   :  { %v2023_v29 = vpop.eup %2022 }
0x1faf   :  { %v1337_v9 = vadd.f32 1.0, %v2023_v29 }
0x1fb1   :  { %2024 = vrcp.f32 %v1337_v9 }
0x1fbb   :  { %v2025_v10 = vpop.eup %2024 }
0x1fbc   :  { %v1340_v12 = vmul.f32 2.0, %v2025_v10  ;;  %v1342_v25 = vmul.f32 %v2025_v10, %v1240_v60 }
0x1fbe   :  { %v1636_v14 = vadd.f32 -1.0, %v1340_v12 }
0x1fc0   :  { %1344 = vrot.lane.b32.xlu0 %v1636_v14, %s2116_s11 }
0x2032   :  { %v1345_v61 = vpop.permute.xlu0 %1344 }
0x2033   :  { %v1347_v28 = vmul.f32 %v2025_v10, %v1345_v61 }
0x2035   :  { %1349 = vrot.lane.b32.xlu1 %v1347_v28, %s2121_s12 }
0x20a7   :  { %v1350_v63 = vpop.permute.xlu1 %1349 }
0x20a8   :  { %v1352_v15 = vadd.f32 %v1350_v63, %v1342_v25 }
0x20aa   :  { %2026 = vtanh.f32 %v1352_v15 }
0x20b4   :  { %v2027_v16 = vpop.eup %2026 }
0x20b5   :  { %1355 = vrot.lane.b32.xlu0 %v2027_v16, %s2116_s11 }
0x2127   :  { %v1356_v17 = vpop.permute.xlu0 %1355 }
0x2128   :  { %v2350_v18 = vmul.f32 %v2025_v10, %v1356_v17 }
0x212a   :  { %1362 = vrot.lane.b32.xlu1 %v2350_v18, %s2121_s12 }
0x219c   :  { %v1363_v19 = vpop.permute.xlu1 %1362 }
0x219d   :  { %1849 = vmatmul.mubr.msk.f32.vlgmr.msra.gmra.mrb[12].mxu0 %vm168_vm2, %v1363_v19 }
0x2270   :  { %v1432_v8 = vpop.f32.mrb[12].mxu0 }
0x2271   :  { %v1433_v20 = vadd.f32 %v1432_v8, %v2301_v5  ;;  %v1850_v21 = vpop.f32.mrb[13].mxu0 }
0x2273   :  { %v1638_v22 = vmul.f32 -1.442695, %v1433_v20 }
0x2275   :  { %2028 = vpow2.f32 %v1638_v22 }
0x227f   :  { %v2029_v23 = vpop.eup %2028 }
0x2280   :  { %v1439_v24 = vadd.f32 1.0, %v2029_v23 }
0x2282   :  { %2030 = vrcp.f32 %v1439_v24 }
0x228c   :  { %v2031_v30 = vpop.eup %2030 }
0x228d   :  { %v1442_v31 = vmul.f32 2.0, %v2031_v30  ;;  %v1444_v35 = vmul.f32 %v2031_v30, %v1352_v15 }
0x228f   :  { %v1639_v32 = vadd.f32 -1.0, %v1442_v31 }
0x2291   :  { %1446 = vrot.lane.b32.xlu0 %v1639_v32, %s2116_s11 }
0x2303   :  { %v1447_v33 = vpop.permute.xlu0 %1446 }
0x2304   :  { %v1449_v34 = vmul.f32 %v2031_v30, %v1447_v33 }
0x2306   :  { %1451 = vrot.lane.b32.xlu1 %v1449_v34, %s2121_s12 }
0x2378   :  { %v1452_v36 = vpop.permute.xlu1 %1451 }
0x2379   :  { %v1454_v13 = vadd.f32 %v1452_v36, %v1444_v35 }
0x237b   :  { %2032 = vtanh.f32 %v1454_v13 }
0x2385   :  { %v2033_v37 = vpop.eup %2032 }
0x2386   :  { %1457 = vrot.lane.b32.xlu0 %v2033_v37, %s2116_s11 }
0x23f8   :  { %v1458_v38 = vpop.permute.xlu0 %1457 }
0x23f9   :  { %v1460_v39 = vmul.f32 %v2031_v30, %v1458_v38 }
0x23fb   :  { %1473 = vrot.lane.b32.xlu1 %v1460_v39, %s2121_s12 }
0x246d   :  { %v1474_v40 = vpop.permute.xlu1 %1473 }
0x246e   :  { %1860 = vmatmul.mubr.msk.f32.vlgmr.msra.gmra.mrb[12].mxu1 %vm168_vm2, %v1474_v40 }
0x2541   :  { %v1543_v41 = vpop.f32.mrb[12].mxu1 }
0x2542   :  { %v1544_v42 = vadd.f32 %v1543_v41, %v2301_v5  ;;  %v1861_v43 = vpop.f32.mrb[13].mxu1  ;;  %v1030_v5 = vrot.slane %v2307_v27, %v1029_v55  ;;  %v1468_v27 = vrot.slane %v1460_v39, %v1029_v55 }
0x2544   :  { %v1641_v44 = vmul.f32 -1.442695, %v1544_v42 }
0x2546   :  { %2034 = vpow2.f32 %v1641_v44 }
0x2550   :  { %v2035_v45 = vpop.eup %2034 }
0x2551   :  { %v1550_v47 = vadd.f32 1.0, %v2035_v45 }
0x2553   :  { %2036 = vrcp.f32 %v1550_v47 }
0x255d   :  { %v2037_v48 = vpop.eup %2036 }
0x255e   :  { %v1553_v49 = vmul.f32 2.0, %v2037_v48  ;;  %v1555_v58 = vmul.f32 %v2037_v48, %v1454_v13 }
0x2560   :  { %v1642_v50 = vadd.f32 -1.0, %v1553_v49 }
0x2562   :  { %1557 = vrot.lane.b32.xlu0 %v1642_v50, %s2116_s11 }
0x25d4   :  { %v1558_v54 = vpop.permute.xlu0 %1557 }
0x25d5   :  { %v1560_v56 = vmul.f32 %v2037_v48, %v1558_v54 }
0x25d7   :  { %1562 = vrot.lane.b32.xlu1 %v1560_v56, %s2121_s12 }
0x25db   :  { %1031 = vrot.lane.b32.xlu1 %v1030_v5, %s2121_s12 }
0x25df   :  { %1255 = vrot.lane.b32.xlu1 %v1254_v57, %s2120_s2 }
0x2649   :  { %v1563_v11 = vpop.permute.xlu1 %1562 }
0x264a   :  { %v1565_v59 = vadd.f32 %v1563_v11, %v1555_v58 }
0x264c   :  { %2038 = vtanh.f32 %v1565_v59 }
0x264d   :  { %v1032_v60 = vpop.permute.xlu1 %1031 }
0x264e   :  { %1035 = vst.msk [vmem:[#allocation7] sm:$0x3] %vm1034_vm3, %v1032_v60 }
0x2651   :  { %v1256_v3 = vpop.permute.xlu1 %1255 }
0x2656   :  { %v2039_v6 = vpop.eup %2038 }
0x2657   :  { %1568 = vrot.lane.b32.xlu0 %v2039_v6, %s2116_s11 }
0x265b   :  { %1143 = vrot.lane.b32.xlu0 %v1142_v62, %s2116_s11 }
0x265f   :  { %1469 = vrot.lane.b32.xlu0 %v1468_v27, %s2121_s12 }
0x26c9   :  { %v1569_v0 = vpop.permute.xlu0 %1568 }
0x26ca   :  { %v1571_v1 = vmul.f32 %v2037_v48, %v1569_v0 }
0x26cc   :  { %v1579_v2 = vrot.slane %v1571_v1, %v1029_v55 }
0x26cd   :  { %v1144_v26 = vpop.permute.xlu0 %1143 }
0x26ce   :  { %1147 = vst.msk [vmem:[#allocation7] sm:$0x3] %vm1146_vm4, %v1144_v26  ;;  %1580 = vrot.lane.b32.xlu1 %v1579_v2, %s2116_s11 }
0x26cf   :  { %1259 = vst.msk [vmem:[#allocation7] sm:$0x3] %vm1258_vm5, %v1256_v3 }
0x26d0   :  { %1360 = vst.msk [vmem:[#allocation7] sm:$0x3] %vm1359_vm6, %v2350_v18 }
0x26d1   :  { %v1470_v46 = vpop.permute.xlu0 %1469 }
0x26d2   :  { %1472 = vst.msk [vmem:[#allocation7 + $0x2] sm:$0x3] %vm1034_vm3, %v1470_v46 }
0x2740   :  { %v1581_v4 = vpop.permute.xlu1 %1580 }
0x2741   :  { %1583 = vst.msk [vmem:[#allocation7 + $0x2] sm:$0x3] %vm1146_vm4, %v1581_v4 }
0x2742   :  { %2095 = shalt.err (!%p2092_p6)
}
0x2743   :  { %s2096_s18 = scalar_lea.hbm %s2394_s3, 64 }
0x2744   :  { %p2097_p7 = scmp.ne.s32.totalorder %s2394_s3, %s2096_s18  ;;  %p2100_p8 = scmp.lt.u32.totalorder %s2096_s18, %s2394_s3 }
0x2746   :  { %p2102_p9 = pnand %p2100_p8, %p2097_p7 }
0x2748   :  { %2105 = shalt.err (!%p2102_p9)
}
0x2749   :  { %1593 = dma.vmem_to_hbm [thread:$0]  %s1591_s14, 64, %s2394_s3, [#allocation4]  }
0x274a   :  { %2110 = dma.done.wait [#allocation4], 64  }
0x274b   :  { %2111 = vsyncadd [#allocation4], 4294967232 }
0x274c   :  { %1597 = vsyncpa [#allocation3], 1 }
0x274d   :  { %1598 = vsyncpa [#allocation6], 1 }
0x274e   :  { %1599 = vsyncpa [#allocation4], 1 }

</bundles_post_ra>
